<compile_context>
chip_gen: v7x
topology: tpu7x:2x2x1
jax: 0.10.0
libtpu: 0.0.40
codegen_flags: <defaults>
</compile_context>

<pallas_src>
import math

import jax
import jax.numpy as jnp
from jax.experimental import pallas as pl
from jax.experimental.pallas import tpu as pltpu


def _round_up(n, m):
    return ((n + m - 1) // m) * m


def _choose_lane_tile(batch, block_batch):
    """Lane tile: multiple of 128, no bigger than needed, and capped near B/2
    so the grid has >= 2 steps for v7x megacore sharding when B allows it."""
    tb = max(128, _round_up(min(block_batch, batch), 128))
    half = max(128, _round_up(pl.cdiv(batch, 2), 128))
    return min(tb, half)


def _net_kernel(xt_ref, w1_ref, b1_ref, v_ref, c_ref, out_ref):
    # Feature-major layout: batch on the lane axis.
    #   xt_ref : [11, TB]   w1_ref : [6, 11]   b1_ref : [6, 1]
    #   v_ref  : [1, 6]     c_ref  : [1, 1]    out_ref: [2, TB]
    x = xt_ref[...].astype(jnp.float32)  # matches x.float() in the PyTorch module

    # fc_1 + ReLU  (MXU matmul with lane-dense N=TB, VPU max)
    h1 = jnp.dot(w1_ref[...], x, preferred_element_type=jnp.float32) + b1_ref[...]
    h1 = jnp.maximum(h1, 0.0)

    # fc_2 collapsed to the logit difference d = (l1 - l0); exact 2-class
    # softmax is then [1 - sigmoid(d), sigmoid(d)] (single EUP sigmoid, no
    # XLU reductions, no divide, no second matmul row).
    d = jnp.dot(v_ref[...], h1, preferred_element_type=jnp.float32) + c_ref[...]  # [1, TB]
    p1 = jax.nn.sigmoid(d)

    out_ref[0:1, :] = 1.0 - p1
    out_ref[1:2, :] = p1


def net_forward_feature_major(xt, w1, b1, w2, b2, *, block_batch=4096):
    """Feature-major entry point (no wrapper-side relayout passes).

    xt: [11, B]  ->  [2, B] softmax probabilities (float32, class-major).
    w1: [6, 11], b1: [6], w2: [2, 6], b2: [2]  (PyTorch nn.Linear layout).
    """
    in_features, B = xt.shape
    hidden = w1.shape[0]
    out_features = w2.shape[0]

    b1c = b1.reshape(hidden, 1).astype(jnp.float32)                 # [6, 1]
    v = (w2[1:2, :] - w2[0:1, :]).astype(jnp.float32)               # [1, 6]
    c = (b2[1] - b2[0]).reshape(1, 1).astype(jnp.float32)           # [1, 1]

    tb = _choose_lane_tile(B, block_batch)
    grid = (pl.cdiv(B, tb),)

    return pl.pallas_call(
        _net_kernel,
        out_shape=jax.ShapeDtypeStruct((out_features, B), jnp.float32),
        grid=grid,
        in_specs=[
            pl.BlockSpec((in_features, tb), lambda i: (0, i)),       # x tile
            pl.BlockSpec((hidden, in_features), lambda i: (0, 0)),   # w1 (resident)
            pl.BlockSpec((hidden, 1), lambda i: (0, 0)),             # b1 (resident)
            pl.BlockSpec((1, hidden), lambda i: (0, 0)),             # v = w2[1]-w2[0]
            pl.BlockSpec((1, 1), lambda i: (0, 0)),                  # c = b2[1]-b2[0]
        ],
        out_specs=pl.BlockSpec((out_features, tb), lambda i: (0, i)),
        compiler_params=pltpu.CompilerParams(
            dimension_semantics=("parallel",),        # megacore sharding on v7x
            vmem_limit_bytes=32 * 1024 * 1024,        # safe on v5e/v6e/v7x; tiles are tiny
        ),
    )(xt, w1, b1c, v, c)


def net_forward(x, w1, b1, w2, b2, *, block_batch=4096):
    """PyTorch-compatible entry: x [B, 11] -> [B, 2] softmax probabilities.

    Note: this pays one extra HBM pass for x.T (and a small one for the
    output transpose).  Producers that can supply feature-major [11, B] data
    and consume class-major [2, B] output should use
    `net_forward_feature_major` to avoid both.
    """
    out_t = net_forward_feature_major(x.T, w1, b1, w2, b2, block_batch=block_batch)
    return out_t.T  # back to [B, 2]


def init_params(key, input_size=11, hidden=6, out=2):
    """Deterministic init mimicking PyTorch nn.Linear default (uniform +/- 1/sqrt(fan_in))."""
    k1, k2, k3, k4 = jax.random.split(key, 4)
    bound1 = 1.0 / math.sqrt(input_size)
    bound2 = 1.0 / math.sqrt(hidden)
    # PyTorch layout: weight [out_features, in_features], bias [out_features].
    w1 = jax.random.uniform(k1, (hidden, input_size), jnp.float32, -bound1, bound1)
    b1 = jax.random.uniform(k2, (hidden,), jnp.float32, -bound1, bound1)
    w2 = jax.random.uniform(k3, (out, hidden), jnp.float32, -bound2, bound2)
    b2 = jax.random.uniform(k4, (out,), jnp.float32, -bound2, bound2)
    return w1, b1, w2, b2


def reference_forward(x, w1, b1, w2, b2):
    h1 = jnp.maximum(x @ w1.T + b1, 0.0)
    logits = h1 @ w2.T + b2
    return jax.nn.softmax(logits, axis=-1)


if __name__ == "__main__":
    key = jax.random.PRNGKey(0)
    kx, kx2, kp = jax.random.split(key, 3)

    input_size = 11
    w1, b1, w2, b2 = init_params(kp, input_size=input_size, hidden=6, out=2)

    # Small, spec-consistent case (batch=4).
    x_small = jax.random.normal(kx, (4, input_size), jnp.float32)
    out_small = jax.block_until_ready(net_forward(x_small, w1, b1, w2, b2))
    ref_small = reference_forward(x_small, w1, b1, w2, b2)
    assert out_small.shape == (4, 2)
    assert jnp.allclose(out_small, ref_small, atol=1e-5, rtol=1e-5)
    assert jnp.allclose(jnp.sum(out_small, axis=-1), 1.0, atol=1e-5)

    # Feature-major entry (no wrapper relayout) on the same data.
    out_fm = jax.block_until_ready(net_forward_feature_major(x_small.T, w1, b1, w2, b2))
    assert out_fm.shape == (2, 4)
    assert jnp.allclose(out_fm.T, ref_small, atol=1e-5, rtol=1e-5)

    # Larger case exercising >=2 pipelined grid steps + a partial last tile
    # (default block_batch, tile auto-capped so the grid has >= 2 steps).
    x_big = jax.random.normal(kx2, (1000, input_size), jnp.float32)
    out_big = jax.block_until_ready(net_forward(x_big, w1, b1, w2, b2))
    ref_big = reference_forward(x_big, w1, b1, w2, b2)
    assert out_big.shape == (1000, 2)
    assert jnp.allclose(out_big, ref_big, atol=1e-5, rtol=1e-5)
    assert jnp.allclose(jnp.sum(out_big, axis=-1), 1.0, atol=1e-5)

    print("KERNEL_OK")
</pallas_src>

<mosaic_0001>
module attributes {stable_mosaic.version = 11 : i64} {
  func.func @_net_kernel(%arg0: i32, %arg1: memref<11x128xf32, #tpu.memory_space<vmem>>, %arg2: memref<6x11xf32, #tpu.memory_space<vmem>>, %arg3: memref<6x1xf32, #tpu.memory_space<vmem>>, %arg4: memref<1x6xf32, #tpu.memory_space<vmem>>, %arg5: memref<1x1xf32, #tpu.memory_space<vmem>>, %arg6: memref<2x128xf32, #tpu.memory_space<vmem>>) attributes {dimension_semantics = [#tpu.dimension_semantics<parallel>], iteration_bounds = array<i64: 1>, scalar_prefetch = 0 : i64, scratch_operands = 0 : i64, tpu.core_type = #tpu.core_type<tc>, window_params = [{transform_indices = @transform_0, window_bounds = array<i64: 11, 128>}, {pipeline_mode = #tpu.pipeline_mode<synchronous>, transform_indices = @transform_1, window_bounds = array<i64: 6, 11>}, {pipeline_mode = #tpu.pipeline_mode<synchronous>, transform_indices = @transform_2, window_bounds = array<i64: 6, 1>}, {pipeline_mode = #tpu.pipeline_mode<synchronous>, transform_indices = @transform_3, window_bounds = array<i64: 1, 6>}, {pipeline_mode = #tpu.pipeline_mode<synchronous>, transform_indices = @transform_4, window_bounds = array<i64: 1, 1>}, {transform_indices = @transform_5, window_bounds = array<i64: 2, 128>}]} {
    %c0 = arith.constant 0 : index
    %c0_0 = arith.constant 0 : index
    %0 = vector.load %arg1[%c0, %c0_0] : memref<11x128xf32, #tpu.memory_space<vmem>>, vector<11x128xf32>
    %c0_1 = arith.constant 0 : index
    %c0_2 = arith.constant 0 : index
    %1 = vector.load %arg2[%c0_1, %c0_2] : memref<6x11xf32, #tpu.memory_space<vmem>>, vector<6x11xf32>
    %cst = arith.constant dense<0.000000e+00> : vector<6x128xf32>
    %2 = tpu.matmul %1, %0, %cst {dimension_numbers = #tpu.dot_dimension_numbers<[1], [0], [0], [1], [0, 0, 1, 1], [], []>} : vector<6x11xf32>, vector<11x128xf32>, vector<6x128xf32> -> vector<6x128xf32>
    %c0_3 = arith.constant 0 : index
    %c0_4 = arith.constant 0 : index
    %3 = vector.load %arg3[%c0_3, %c0_4] : memref<6x1xf32, #tpu.memory_space<vmem>>, vector<6x1xf32>
    %4 = vector.broadcast %3 : vector<6x1xf32> to vector<6x128xf32>
    %5 = arith.addf %2, %4 : vector<6x128xf32>
    %cst_5 = arith.constant 0.000000e+00 : f32
    %6 = vector.broadcast %cst_5 : f32 to vector<6x128xf32>
    %7 = arith.maximumf %5, %6 : vector<6x128xf32>
    %c0_6 = arith.constant 0 : index
    %c0_7 = arith.constant 0 : index
    %8 = vector.load %arg4[%c0_6, %c0_7] : memref<1x6xf32, #tpu.memory_space<vmem>>, vector<1x6xf32>
    %cst_8 = arith.constant dense<0.000000e+00> : vector<1x128xf32>
    %9 = tpu.matmul %8, %7, %cst_8 {dimension_numbers = #tpu.dot_dimension_numbers<[1], [0], [0], [1], [0, 0, 1, 1], [], []>} : vector<1x6xf32>, vector<6x128xf32>, vector<1x128xf32> -> vector<1x128xf32>
    %c0_9 = arith.constant 0 : index
    %c0_10 = arith.constant 0 : index
    %10 = vector.load %arg5[%c0_9, %c0_10] : memref<1x1xf32, #tpu.memory_space<vmem>>, vector<1x1xf32>
    %11 = vector.broadcast %10 : vector<1x1xf32> to vector<1x128xf32>
    %12 = arith.addf %9, %11 : vector<1x128xf32>
    %13 = arith.negf %12 : vector<1x128xf32>
    %14 = math.exp %13 : vector<1x128xf32>
    %cst_11 = arith.constant 1.000000e+00 : f32
    %15 = vector.broadcast %cst_11 : f32 to vector<1x128xf32>
    %16 = arith.addf %15, %14 : vector<1x128xf32>
    %17 = arith.divf %15, %16 : vector<1x128xf32>
    %cst_12 = arith.constant 1.000000e+00 : f32
    %18 = vector.broadcast %cst_12 : f32 to vector<1x128xf32>
    %19 = arith.subf %18, %17 : vector<1x128xf32>
    %c0_13 = arith.constant 0 : index
    %c0_14 = arith.constant 0 : index
    %20 = vector.load %arg6[%c0_13, %c0_14] : memref<2x128xf32, #tpu.memory_space<vmem>>, vector<1x128xf32>
    tpu.vector_store %arg6[%c0_13, %c0_14], %19 {strides = array<i32>} : memref<2x128xf32, #tpu.memory_space<vmem>>, vector<1x128xf32>,
    %c1 = arith.constant 1 : index
    %c0_15 = arith.constant 0 : index
    %21 = vector.load %arg6[%c1, %c0_15] : memref<2x128xf32, #tpu.memory_space<vmem>>, vector<1x128xf32>
    tpu.vector_store %arg6[%c1, %c0_15], %17 {strides = array<i32>} : memref<2x128xf32, #tpu.memory_space<vmem>>, vector<1x128xf32>,
    return
  }
  func.func @transform_0(%arg0: i32) -> (i32, i32) {
    %c0_i32 = arith.constant 0 : i32
    %c0_i32_0 = arith.constant 0 : i32
    return %c0_i32, %arg0 : i32, i32
  }
  func.func @transform_1(%arg0: i32) -> (i32, i32) {
    %c0_i32 = arith.constant 0 : i32
    %c0_i32_0 = arith.constant 0 : i32
    %c0_i32_1 = arith.constant 0 : i32
    return %c0_i32, %c0_i32_0 : i32, i32
  }
  func.func @transform_2(%arg0: i32) -> (i32, i32) {
    %c0_i32 = arith.constant 0 : i32
    %c0_i32_0 = arith.constant 0 : i32
    %c0_i32_1 = arith.constant 0 : i32
    return %c0_i32, %c0_i32_0 : i32, i32
  }
  func.func @transform_3(%arg0: i32) -> (i32, i32) {
    %c0_i32 = arith.constant 0 : i32
    %c0_i32_0 = arith.constant 0 : i32
    %c0_i32_1 = arith.constant 0 : i32
    return %c0_i32, %c0_i32_0 : i32, i32
  }
  func.func @transform_4(%arg0: i32) -> (i32, i32) {
    %c0_i32 = arith.constant 0 : i32
    %c0_i32_0 = arith.constant 0 : i32
    %c0_i32_1 = arith.constant 0 : i32
    return %c0_i32, %c0_i32_0 : i32, i32
  }
  func.func @transform_5(%arg0: i32) -> (i32, i32) {
    %c0_i32 = arith.constant 0 : i32
    %c0_i32_0 = arith.constant 0 : i32
    return %c0_i32, %arg0 : i32, i32
  }
}

</mosaic_0001>

<bundles_post_ra>
// kernel: tpu_custom_call.1
= control target key start
LH: loop header
LB: loop body
LE: loop exit
PB: predicated region body
PF: predicated region fallthrough
CT: control target
= control target key end

     0   :  { %s350_s0 = inlined_call_operand.vmem [shape: f32[11,4], index: 0, kind: input, shape index: {}]   ;;  %s351_s1 = inlined_call_operand.vmem [shape: f32[6,11], index: 1, kind: input, shape index: {}]   ;;  %s352_s2 = inlined_call_operand.vmem [shape: f32[6,1], index: 2, kind: input, shape index: {}]   ;;  %s353_s3 = inlined_call_operand.vmem [shape: f32[1,6], index: 3, kind: input, shape index: {}]   ;;  %s354_s4 = inlined_call_operand.<no memory space> [shape: f32[1,1], index: 4, kind: input, shape index: {}]   ;;  %s355_s5 = inlined_call_operand.hbm [shape: f32[2,4], index: 5, kind: output, shape index: {}]  }
   0x1   :  { %v10_v0 = vstv %s354_s4 }
   0x2   :  { %11 = vst [vmem:[#allocation2] sm:$0x1] %v10_v0 }
   0x3   :  { %v23_v1 = vld [vmem:[%s350_s0] sm:$0xff]  ;;  %v24_v2 = vld [vmem:[%s350_s0 + $0x8] sm:$0x7]  ;;  %vm36_vm0 = vcmask 1042432   ;;  %v284_v3 = vmov 0.0|0.0   ;;  %vm285_vm1 = vmmov 1  }
   0x4   :  { %245 = vmatprep.subr.bf16.mxu0 %v284_v3  ;;  %v246_v4 = vpack.c.bf16 %v24_v2, %v23_v1  ;;  %vm247_vm2 = vmpackc.low %vm36_vm0, %vm285_vm1  ;;  %vm286_vm3 = vmmov 0   ;;  %v287_v5 = vmov 0.0   ;;  %v26_v6 = vld [vmem:[%s352_s2] sm:$0x3f]  ;;  %vm32_vm4 = vcmask 89088  }
   0x5   :  { %237 = vmatprep.mubr.msk.f32.mxu0 %vm286_vm3, %v287_v5  ;;  %240 = vmatprep.subr.mxu1 %v287_v5  ;;  %v25_v7 = vld [vmem:[%s351_s1] sm:$0x3f]  ;;  %v288_v8 = vmov 0  }
   0x6   :  { %248 = vmatpush3.bf16.msk.msra.mxu0 %vm247_vm2, %v246_v4  ;;  %255 = vset.pattern.permute.xlu0 %v288_v8 }
   0x7   :  { %12 = vsyncpa [#allocation4], 0  ;;  %29 = vperm.xlu0 %255, %v26_v6   ;;  %242 = vmatprep.mubr.msk.f32.mxu1 %vm286_vm3, %v287_v5  ;;  %vm126_vm5 = vcmask 1045504   ;;  %v111_v15 = vld [vmem:[%s353_s3] sm:$0x1]  ;;  %vm122_vm6 = vcmask 48128   ;;  %v118_v16 = vlaneseq }
   0x8   :  { %s289_s1 = smov [#allocation3]  }
   0x9   :  { %v112_v9 = vld [vmem:[#allocation2] sm:$0x1]  ;;  %238 = vmatmul.mubr.msk.f32.vlgmr.msra.gmra.mrb[0].mxu0 %vm32_vm4, %v25_v7  ;;  %v119_v17 = vshrl.u32 %v118_v16, 7  ;;  %s215_s27 = sshll.u32 %s289_s1, 4  ;;  %s216_s27 = int_to_ptr.vmem [resolvable:$true] %s215_s27 }
   0xa   :  { %s260_s3 = scalar_lea.vmem %s216_s27, 32  ;;  %p265_p1 = scmp.lt.s32.totalorder %s216_s27, %s216_s27 }
   0xb   :  { %115 = vperm.xlu0 %255, %v112_v9   ;;  %v120_v18 = vsub.s32 0, %v119_v17  ;;  %p261_p0 = scmp.ne.s32.totalorder %s216_s27, %s260_s3  ;;  %p266_p2 = scmp.lt.s32.totalorder %s260_s3, %s260_s3 }
   0xd   :  { %p267_p3 = por %p266_p2, %p265_p1 }
   0xf   :  { %p268_p4 = pnand %p267_p3, %p261_p0 }
  0x86   :  { %v30_v10 = vpop.permute.xlu0 %29 }
  0x8a   :  { %v116_v19 = vpop.permute.xlu0 %115 }
  0x8b   :  { %v121_v20 = vrot.slane %v116_v19, %v120_v18 }
  0xdc   :  { %v106_v11 = vpop.f32.mrb[0].mxu0 }
  0xdd   :  { %v107_v12 = vadd.f32 %v106_v11, %v30_v10  ;;  %v239_v13 = vpop.f32.mrb[1].mxu0 }
  0xdf   :  { %v110_v14 = vmax.f32 %v107_v12, 0.0 }
  0xe1   :  { %241 = vmatpush3.msk.msra.mxu1 %vm126_vm5, %v110_v14 }
  0xe2   :  { %243 = vmatmul.mubr.msk.f32.vlgmr.msra.gmra.mrb[0].mxu1 %vm122_vm6, %v111_v15 }
 0x1b5   :  { %v196_v21 = vpop.f32.mrb[0].mxu1 }
 0x1b6   :  { %v197_v22 = vadd.f32 %v196_v21, %v121_v20  ;;  %v244_v23 = vpop.f32.mrb[1].mxu1 }
 0x1b8   :  { %v227_v24 = vmul.f32 -1.442695, %v197_v22 }
 0x1ba   :  { %256 = vpow2.f32 %v227_v24 }
 0x1c4   :  { %v257_v25 = vpop.eup %256 }
 0x1c5   :  { %v203_v26 = vadd.f32 1.0, %v257_v25 }
 0x1c7   :  { %258 = vrcp.f32 %v203_v26 }
 0x1d1   :  { %v259_v27 = vpop.eup %258 }
 0x1d2   :  { %208 = vst [vmem:[#allocation3 + $0x1] sm:$0x1] %v259_v27  ;;  %v206_v28 = vsub.f32 1.0, %v259_v27 }
 0x1d4   :  { %207 = vst [vmem:[#allocation3] sm:$0x1] %v206_v28 }
 0x1d5   :  { %271 = shalt.err (!%p268_p4)
}
 0x1d6   :  { %s272_s30 = scalar_lea.hbm %s355_s5, 32 }
 0x1d7   :  { %p273_p5 = scmp.ne.s32.totalorder %s355_s5, %s272_s30  ;;  %p276_p6 = scmp.lt.u32.totalorder %s272_s30, %s355_s5 }
 0x1d9   :  { %p278_p7 = pnand %p276_p6, %p273_p5 }
 0x1db   :  { %281 = shalt.err (!%p278_p7)
}
 0x1dc   :  { %218 = dma.vmem_to_hbm [thread:$0]  %s216_s27, 32, %s355_s5, [#allocation4]  }
 0x1dd   :  { %282 = dma.done.wait [#allocation4], 32  }
 0x1de   :  { %283 = vsyncadd [#allocation4], 4294967264 }
 0x1df   :  { %222 = vsyncpa [#allocation4], 1 }

</bundles_post_ra>
